<compile_context>
chip_gen: v5e
topology: v5e:2x2
jax: 0.10.0
libtpu: 0.0.40
codegen_flags: <defaults>
</compile_context>

<pallas_src>
import functools
import math

import jax
import jax.numpy as jnp
from jax.experimental import pallas as pl
from jax.experimental.pallas import tpu as pltpu

_MiB = 1024 * 1024


# ---------------------------------------------------------------------------
# Kernels
# ---------------------------------------------------------------------------
def _t_kernel(w_rows_ref, w_full_ref, q_full_ref, q_rows_ref, t_ref, *, epsilon):
    """Per-channel rescaling T for one row tile of W, written as a (1, TR) row.

    T[j] = 2 / sum_k |q_inv[j] * WWT[j,k] * q_abs[k]|
         = 2 * (q_abs[j] + eps) / sum_k |WWT[j,k]| * q_abs[k]      (q_abs >= 0)

    The tile computes WWT_rows = W_rows @ W^T (TR, cout) and reduces it against
    q_abs with a matvec oriented so the result is already the (1, TR) output
    row — no in-kernel transpose / cross-sublane reduce.
    """
    wwt = jax.lax.dot_general(
        w_rows_ref[...], w_full_ref[...], (((1,), (1,)), ((), ())),
        preferred_element_type=jnp.float32)                         # (TR, cout)
    q_abs = jnp.abs(q_full_ref[...].astype(jnp.float32))            # (1, cout)
    denom = jax.lax.dot_general(
        q_abs, jnp.abs(wwt), (((1,), (1,)), ((), ())),
        preferred_element_type=jnp.float32)                         # (1, TR)
    q_rows_abs = jnp.abs(q_rows_ref[...].astype(jnp.float32))       # (1, TR)
    # NOTE: same div-by-zero behaviour as the PyTorch reference for all-zero
    # weight rows (no extra guard, and no approx reciprocal here).
    t_ref[...] = 2.0 * (q_rows_abs + epsilon) / denom


def _sdp_fwd_kernel(x_ref, w_ref, b_ref, t_ref, o_ref):
    """out = x - (T * relu(x @ W^T + b)) @ W for one batch tile.

    Matmul operands stay in their native dtype (bf16-native MXU with f32
    accumulation); bias/T/ReLU arithmetic is f32.
    """
    x = x_ref[...]                                   # (TB, cin)  native dtype
    w = w_ref[...]                                   # (cout, cin) resident
    # res = x @ W^T : contract on cin without an explicit transpose.
    res = jax.lax.dot_general(x, w, (((1,), (1,)), ((), ())),
                              preferred_element_type=jnp.float32)   # (TB, cout)
    res = jnp.maximum(res + b_ref[...], 0.0) * t_ref[...]           # f32
    back = jnp.dot(res.astype(w.dtype), w,
                   preferred_element_type=jnp.float32)              # (TB, cin)
    o_ref[...] = (x.astype(jnp.float32) - back).astype(o_ref.dtype)


# ---------------------------------------------------------------------------
# VMEM / tiling helpers
# ---------------------------------------------------------------------------
def _vmem_capacity_bytes():
    try:
        cap = int(pltpu.get_tpu_info().vmem_capacity_bytes)
        if cap > 0:
            return cap
    except Exception:
        pass
    return 64 * _MiB      # conservative: v7x per-TensorCore VMEM


def _vmem_budget_bytes(capacity):
    if capacity >= 100 * _MiB:                 # v5e / v6e (128 MiB physical)
        return 96 * _MiB
    return max(capacity - 8 * _MiB, 32 * _MiB)  # v7x: ~56 MiB ceiling


def _choose_batch_tile(batch, cin, itemsize, capacity):
    """Batch tile sized so the x block is ~8 MiB on 128 MiB-VMEM parts and
    ~4 MiB on v7x; multiple of 8, capped at the batch."""
    target = 8 * _MiB if capacity >= 100 * _MiB else 4 * _MiB
    tb = target // max(1, cin * itemsize)
    tb -= tb % 8
    tb = max(tb, 8)
    return min(tb, batch) if batch >= 8 else batch


def _fwd_vmem_bytes(tb, cin, cout, x_it, w_it, w_bufs):
    """Honest per-step working-set estimate for the forward kernel."""
    xblk = tb * cin * x_it
    est = 4 * xblk                            # double-buffered x + out blocks
    est += w_bufs * cout * cin * w_it         # resident weights
    est += 2 * 2 * cout * 4                   # bias + T rows (f32)
    est += tb * cin * 4                       # x upcast (f32) for subtraction
    est += tb * cout * 4                      # res (f32)
    est += tb * cout * w_it                   # res cast back for 2nd matmul
    est += tb * cin * 4                       # back (f32)
    est += tb * cin * x_it                    # output cast temp
    return est


def _t_vmem_bytes(tr, cout, cin, w_it):
    est = 2 * tr * cin * w_it                 # W row tile (double-buffered)
    est += 2 * cout * cin * w_it              # full W resident (worst case 2 bufs)
    est += 2 * tr * cout * 4                  # wwt + |wwt| (f32)
    est += 4 * cout * 4 + 2 * tr * 4          # q rows / t blocks
    return est


def _choose_t_row_tile(cout, cin, w_it, budget):
    """Row tile for the T kernel so the (TR, cout) WWT slab fits the budget."""
    tr = cout
    if cout % 128 != 0:
        return tr                             # single step (full-extent dims)
    while (tr > 128 and tr % 2 == 0 and (tr // 2) % 128 == 0
           and _t_vmem_bytes(tr, cout, cin, w_it) > budget):
        tr //= 2
    return tr


def _const_block_spec(block_shape, index_map, single_buffer):
    """Grid-invariant operand: request a single VMEM buffer (no double-buffering)."""
    if single_buffer and hasattr(pl, "Buffered"):
        try:
            return pl.BlockSpec(block_shape, index_map,
                                pipeline_mode=pl.Buffered(1))
        except TypeError:
            pass
    return pl.BlockSpec(block_shape, index_map)


def _call_single_buffer_fallback(build_and_call):
    """Try single-buffered constant operands first; fall back to default
    double-buffering if this Pallas/Mosaic version rejects pipeline_mode."""
    try:
        return build_and_call(True)
    except Exception:
        return build_and_call(False)


def _round_up(n, m):
    return ((n + m - 1) // m) * m


def _pad_last(a, target):
    pad = target - a.shape[-1]
    if pad == 0:
        return a
    return jnp.pad(a, ((0, 0), (0, pad)))


# ---------------------------------------------------------------------------
# pallas_call builders
# ---------------------------------------------------------------------------
def _t_pallas_call(w_p, q_row, *, cout, cin_p, epsilon, budget, single_buffer):
    tr = _choose_t_row_tile(cout, cin_p, w_p.dtype.itemsize, budget)
    grid = cout // tr
    return pl.pallas_call(
        functools.partial(_t_kernel, epsilon=epsilon),
        out_shape=jax.ShapeDtypeStruct((1, cout), jnp.float32),
        grid_spec=pltpu.PrefetchScalarGridSpec(
            num_scalar_prefetch=0,
            grid=(grid,),
            in_specs=[
                pl.BlockSpec((tr, cin_p), lambda i: (i, 0)),              # W rows
                _const_block_spec((cout, cin_p), lambda i: (0, 0),
                                  single_buffer),                         # W full
                _const_block_spec((1, cout), lambda i: (0, 0),
                                  single_buffer),                         # q full
                pl.BlockSpec((1, tr), lambda i: (0, i)),                  # q rows
            ],
            out_specs=pl.BlockSpec((1, tr), lambda i: (0, i)),
        ),
        compiler_params=pltpu.CompilerParams(
            dimension_semantics=("arbitrary",),
            vmem_limit_bytes=budget,
        ),
    )(w_p, w_p, q_row, q_row)


def _fwd_pallas_call(x_p, w_p, b_row, t_row, *, tb, budget, single_buffer):
    B, cin_p = x_p.shape
    cout = w_p.shape[0]
    grid = pl.cdiv(B, tb)
    return pl.pallas_call(
        _sdp_fwd_kernel,
        out_shape=jax.ShapeDtypeStruct((B, cin_p), x_p.dtype),
        grid_spec=pltpu.PrefetchScalarGridSpec(
            num_scalar_prefetch=0,
            grid=(grid,),
            in_specs=[
                pl.BlockSpec((tb, cin_p), lambda i: (i, 0)),              # x tile
                _const_block_spec((cout, cin_p), lambda i: (0, 0),
                                  single_buffer),                         # W
                _const_block_spec((1, cout), lambda i: (0, 0),
                                  single_buffer),                         # bias
                _const_block_spec((1, cout), lambda i: (0, 0),
                                  single_buffer),                         # T
            ],
            out_specs=pl.BlockSpec((tb, cin_p), lambda i: (i, 0)),
        ),
        compiler_params=pltpu.CompilerParams(
            dimension_semantics=("parallel",),
            vmem_limit_bytes=budget,
        ),
    )(x_p, w_p, b_row, t_row)


# ---------------------------------------------------------------------------
# Public wrappers
# ---------------------------------------------------------------------------
def compute_rescaling_t(weights, q, epsilon=1e-6):
    """Parameter-only rescaling row T, shape (1, cout) f32.

    For inference with static weights, call this once and pass the result as
    `precomputed_t` to `sdp_lipschitz_linear` to hoist it out of the hot path.
    """
    cout, cin = weights.shape
    cin_p = _round_up(cin, 128)
    w_p = _pad_last(weights, cin_p)
    q_row = q.reshape(1, cout).astype(jnp.float32)
    capacity = _vmem_capacity_bytes()
    budget = _vmem_budget_bytes(capacity)
    return _call_single_buffer_fallback(
        lambda sb: _t_pallas_call(w_p, q_row, cout=cout, cin_p=cin_p,
                                  epsilon=epsilon, budget=budget,
                                  single_buffer=sb))


def sdp_lipschitz_linear(x, weights, bias, q, epsilon=1e-6,
                         precomputed_t=None, batch_tile=None):
    """Pallas implementation of SDPBasedLipschitzLinearLayer.forward.

    x: (B, cin), weights: (cout, cin), bias: (cout,), q: (cout,) -> (B, cin)
    """
    B, cin = x.shape
    cout, cin_w = weights.shape
    assert cin_w == cin, f"weights expect cin={cin_w}, got x with cin={cin}"
    assert bias.shape == (cout,) and q.shape == (cout,)

    capacity = _vmem_capacity_bytes()
    budget = _vmem_budget_bytes(capacity)

    # Lane-dense cin: pad x / W columns to a multiple of 128 so output stores
    # are unmasked full-width vst.  Padding columns are zero, so results are
    # unchanged; they are sliced off below.
    cin_p = _round_up(cin, 128)
    x_p = _pad_last(x, cin_p)
    w_p = _pad_last(weights, cin_p)

    b_row = bias.reshape(1, cout).astype(jnp.float32)
    q_row = q.reshape(1, cout).astype(jnp.float32)

    # ---- 1) parameter-only rescaling row T (one-shot; hoistable) -----------
    if precomputed_t is not None:
        t_row = jnp.asarray(precomputed_t, jnp.float32).reshape(1, cout)
    else:
        t_row = _call_single_buffer_fallback(
            lambda sb: _t_pallas_call(w_p, q_row, cout=cout, cin_p=cin_p,
                                      epsilon=epsilon, budget=budget,
                                      single_buffer=sb))

    # ---- 2) batched forward, blocked over batch -----------------------------
    if batch_tile is None:
        tb = _choose_batch_tile(B, cin_p, x.dtype.itemsize, capacity)
        # Shrink the batch tile until the per-step working set fits the budget
        # (conservatively assumes double-buffered weights).
        while tb > 8 and _fwd_vmem_bytes(tb, cin_p, cout, x.dtype.itemsize,
                                         w_p.dtype.itemsize, 2) > budget:
            tb = max(8, (tb // 2) // 8 * 8)
    else:
        tb = int(batch_tile)

    out_p = _call_single_buffer_fallback(
        lambda sb: _fwd_pallas_call(x_p, w_p, b_row, t_row, tb=tb,
                                    budget=budget, single_buffer=sb))
    return out_p if cin_p == cin else out_p[:, :cin]


# ---------------------------------------------------------------------------
# Reference (pure JAX) for verification
# ---------------------------------------------------------------------------
def sdp_lipschitz_linear_ref(x, weights, bias, q, epsilon=1e-6):
    res = x @ weights.T + bias
    res = jnp.maximum(res, 0.0)
    q_abs = jnp.abs(q)
    q_r = q_abs[None, :]
    q_inv = (1.0 / (q_abs + epsilon))[:, None]
    T = 2.0 / jnp.abs(q_inv * (weights @ weights.T) * q_r).sum(1)
    res = T * res
    res = res @ weights
    return x - res


if __name__ == "__main__":
    key = jax.random.PRNGKey(0)
    kx, kw, kb, kq, kx2, kw2, kb2, kq2 = jax.random.split(key, 8)

    # --- test 1: f32, cin not a multiple of 128 (exercises lane padding) ----
    B, cin, cout = 8, 32, 64
    x = jax.random.normal(kx, (B, cin), dtype=jnp.float32)
    w_std = math.sqrt(2.0 / (cin + cout))                 # xavier-normal
    weights = (w_std * jax.random.normal(kw, (cout, cin))).astype(jnp.float32)
    bound = 1.0 / math.sqrt(cin)
    bias = jax.random.uniform(kb, (cout,), jnp.float32, minval=-bound, maxval=bound)
    q = jax.random.uniform(kq, (cout,), jnp.float32)

    out = jax.block_until_ready(sdp_lipschitz_linear(x, weights, bias, q))
    ref = sdp_lipschitz_linear_ref(x, weights, bias, q)
    assert out.shape == (B, cin)
    err = float(jnp.max(jnp.abs(out - ref)))
    assert jnp.allclose(out, ref, atol=1e-2, rtol=1e-2), f"f32 max abs err {err:.3e}"

    # --- test 2: bf16 native-MXU path, multi-step batch grid, partial block --
    B2, cin2, cout2 = 80, 256, 128
    x2 = jax.random.normal(kx2, (B2, cin2), dtype=jnp.float32).astype(jnp.bfloat16)
    w_std2 = math.sqrt(2.0 / (cin2 + cout2))
    w2 = (w_std2 * jax.random.normal(kw2, (cout2, cin2))).astype(jnp.bfloat16)
    bound2 = 1.0 / math.sqrt(cin2)
    b2 = jax.random.uniform(kb2, (cout2,), jnp.float32, minval=-bound2, maxval=bound2)
    q2 = jax.random.uniform(kq2, (cout2,), jnp.float32)

    out2 = jax.block_until_ready(
        sdp_lipschitz_linear(x2, w2, b2, q2, batch_tile=32))
    ref2 = sdp_lipschitz_linear_ref(x2.astype(jnp.float32),
                                    w2.astype(jnp.float32), b2, q2)
    assert out2.shape == (B2, cin2) and out2.dtype == jnp.bfloat16
    err2 = float(jnp.max(jnp.abs(out2.astype(jnp.float32) - ref2)))
    assert err2 < 0.1, f"bf16 max abs err {err2:.3e}"

    print("KERNEL_OK")
</pallas_src>

<mosaic_0001>
module attributes {stable_mosaic.version = 11 : i64} {
  func.func @_t_kernel(%arg0: i32, %arg1: memref<64x128xf32, #tpu.memory_space<vmem>>, %arg2: memref<64x128xf32, #tpu.memory_space<vmem>>, %arg3: memref<1x64xf32, #tpu.memory_space<vmem>>, %arg4: memref<1x64xf32, #tpu.memory_space<vmem>>, %arg5: memref<1x64xf32, #tpu.memory_space<vmem>>) attributes {dimension_semantics = [#tpu.dimension_semantics<arbitrary>], iteration_bounds = array<i64: 1>, scalar_prefetch = 0 : i64, scratch_operands = 0 : i64, tpu.core_type = #tpu.core_type<tc>, window_params = [{transform_indices = @transform_0, window_bounds = array<i64: 64, 128>}, {pipeline_mode = #tpu.pipeline_mode<synchronous>, transform_indices = @transform_1, window_bounds = array<i64: 64, 128>}, {pipeline_mode = #tpu.pipeline_mode<synchronous>, transform_indices = @transform_2, window_bounds = array<i64: 1, 64>}, {transform_indices = @transform_3, window_bounds = array<i64: 1, 64>}, {transform_indices = @transform_4, window_bounds = array<i64: 1, 64>}]} {
    %c0 = arith.constant 0 : index
    %c0_0 = arith.constant 0 : index
    %0 = vector.load %arg1[%c0, %c0_0] : memref<64x128xf32, #tpu.memory_space<vmem>>, vector<64x128xf32>
    %c0_1 = arith.constant 0 : index
    %c0_2 = arith.constant 0 : index
    %1 = vector.load %arg2[%c0_1, %c0_2] : memref<64x128xf32, #tpu.memory_space<vmem>>, vector<64x128xf32>
    %cst = arith.constant dense<0.000000e+00> : vector<64x64xf32>
    %2 = tpu.matmul %0, %1, %cst {dimension_numbers = #tpu.dot_dimension_numbers<[1], [1], [0], [0], [0, 0, 1, 0], [], []>} : vector<64x128xf32>, vector<64x128xf32>, vector<64x64xf32> -> vector<64x64xf32>
    %c0_3 = arith.constant 0 : index
    %c0_4 = arith.constant 0 : index
    %3 = vector.load %arg3[%c0_3, %c0_4] : memref<1x64xf32, #tpu.memory_space<vmem>>, vector<1x64xf32>
    %4 = math.absf %3 : vector<1x64xf32>
    %5 = math.absf %2 : vector<64x64xf32>
    %cst_5 = arith.constant dense<0.000000e+00> : vector<1x64xf32>
    %6 = tpu.matmul %4, %5, %cst_5 {dimension_numbers = #tpu.dot_dimension_numbers<[1], [1], [0], [0], [0, 0, 1, 0], [], []>} : vector<1x64xf32>, vector<64x64xf32>, vector<1x64xf32> -> vector<1x64xf32>
    %c0_6 = arith.constant 0 : index
    %c0_7 = arith.constant 0 : index
    %7 = vector.load %arg4[%c0_6, %c0_7] : memref<1x64xf32, #tpu.memory_space<vmem>>, vector<1x64xf32>
    %8 = math.absf %7 : vector<1x64xf32>
    %cst_8 = arith.constant 9.99999997E-7 : f32
    %9 = vector.broadcast %cst_8 : f32 to vector<1x64xf32>
    %10 = arith.addf %8, %9 : vector<1x64xf32>
    %cst_9 = arith.constant 2.000000e+00 : f32
    %11 = vector.broadcast %cst_9 : f32 to vector<1x64xf32>
    %12 = arith.mulf %11, %10 : vector<1x64xf32>
    %13 = arith.divf %12, %6 : vector<1x64xf32>
    %c0_10 = arith.constant 0 : index
    %c0_11 = arith.constant 0 : index
    %14 = vector.load %arg5[%c0_10, %c0_11] : memref<1x64xf32, #tpu.memory_space<vmem>>, vector<1x64xf32>
    tpu.vector_store %arg5[%c0_10, %c0_11], %13 {strides = array<i32>} : memref<1x64xf32, #tpu.memory_space<vmem>>, vector<1x64xf32>,
    return
  }
  func.func @transform_0(%arg0: i32) -> (i32, i32) {
    %c0_i32 = arith.constant 0 : i32
    %c0_i32_0 = arith.constant 0 : i32
    return %arg0, %c0_i32 : i32, i32
  }
  func.func @transform_1(%arg0: i32) -> (i32, i32) {
    %c0_i32 = arith.constant 0 : i32
    %c0_i32_0 = arith.constant 0 : i32
    %c0_i32_1 = arith.constant 0 : i32
    return %c0_i32, %c0_i32_0 : i32, i32
  }
  func.func @transform_2(%arg0: i32) -> (i32, i32) {
    %c0_i32 = arith.constant 0 : i32
    %c0_i32_0 = arith.constant 0 : i32
    %c0_i32_1 = arith.constant 0 : i32
    return %c0_i32, %c0_i32_0 : i32, i32
  }
  func.func @transform_3(%arg0: i32) -> (i32, i32) {
    %c0_i32 = arith.constant 0 : i32
    %c0_i32_0 = arith.constant 0 : i32
    return %c0_i32, %arg0 : i32, i32
  }
  func.func @transform_4(%arg0: i32) -> (i32, i32) {
    %c0_i32 = arith.constant 0 : i32
    %c0_i32_0 = arith.constant 0 : i32
    return %c0_i32, %arg0 : i32, i32
  }
}

module attributes {stable_mosaic.version = 11 : i64} {
  func.func @_t_kernel(%arg0: i32, %arg1: memref<64x128xf32, #tpu.memory_space<vmem>>, %arg2: memref<64x128xf32, #tpu.memory_space<vmem>>, %arg3: memref<1x64xf32, #tpu.memory_space<vmem>>, %arg4: memref<1x64xf32, #tpu.memory_space<vmem>>, %arg5: memref<1x64xf32, #tpu.memory_space<vmem>>) attributes {dimension_semantics = [#tpu.dimension_semantics<arbitrary>], iteration_bounds = array<i64: 1>, scalar_prefetch = 0 : i64, scratch_operands = 0 : i64, tpu.core_type = #tpu.core_type<tc>, window_params = [{transform_indices = @transform_0, window_bounds = array<i64: 64, 128>}, {pipeline_mode = #tpu.pipeline_mode<synchronous>, transform_indices = @transform_1, window_bounds = array<i64: 64, 128>}, {pipeline_mode = #tpu.pipeline_mode<synchronous>, transform_indices = @transform_2, window_bounds = array<i64: 1, 64>}, {transform_indices = @transform_3, window_bounds = array<i64: 1, 64>}, {transform_indices = @transform_4, window_bounds = array<i64: 1, 64>}]} {
    %c0 = arith.constant 0 : index
    %c0_0 = arith.constant 0 : index
    %0 = vector.load %arg1[%c0, %c0_0] : memref<64x128xf32, #tpu.memory_space<vmem>>, vector<64x128xf32>
    %c0_1 = arith.constant 0 : index
    %c0_2 = arith.constant 0 : index
    %1 = vector.load %arg2[%c0_1, %c0_2] : memref<64x128xf32, #tpu.memory_space<vmem>>, vector<64x128xf32>
    %cst = arith.constant dense<0.000000e+00> : vector<64x64xf32>
    %2 = tpu.matmul %0, %1, %cst {dimension_numbers = #tpu.dot_dimension_numbers<[1], [1], [0], [0], [0, 0, 1, 0], [], []>} : vector<64x128xf32>, vector<64x128xf32>, vector<64x64xf32> -> vector<64x64xf32>
    %c0_3 = arith.constant 0 : index
    %c0_4 = arith.constant 0 : index
    %3 = vector.load %arg3[%c0_3, %c0_4] : memref<1x64xf32, #tpu.memory_space<vmem>>, vector<1x64xf32>
    %4 = math.absf %3 : vector<1x64xf32>
    %5 = math.absf %2 : vector<64x64xf32>
    %cst_5 = arith.constant dense<0.000000e+00> : vector<1x64xf32>
    %6 = tpu.matmul %4, %5, %cst_5 {dimension_numbers = #tpu.dot_dimension_numbers<[1], [1], [0], [0], [0, 0, 1, 0], [], []>} : vector<1x64xf32>, vector<64x64xf32>, vector<1x64xf32> -> vector<1x64xf32>
    %c0_6 = arith.constant 0 : index
    %c0_7 = arith.constant 0 : index
    %7 = vector.load %arg4[%c0_6, %c0_7] : memref<1x64xf32, #tpu.memory_space<vmem>>, vector<1x64xf32>
    %8 = math.absf %7 : vector<1x64xf32>
    %cst_8 = arith.constant 9.99999997E-7 : f32
    %9 = vector.broadcast %cst_8 : f32 to vector<1x64xf32>
    %10 = arith.addf %8, %9 : vector<1x64xf32>
    %cst_9 = arith.constant 2.000000e+00 : f32
    %11 = vector.broadcast %cst_9 : f32 to vector<1x64xf32>
    %12 = arith.mulf %11, %10 : vector<1x64xf32>
    %13 = arith.divf %12, %6 : vector<1x64xf32>
    %c0_10 = arith.constant 0 : index
    %c0_11 = arith.constant 0 : index
    %14 = vector.load %arg5[%c0_10, %c0_11] : memref<1x64xf32, #tpu.memory_space<vmem>>, vector<1x64xf32>
    tpu.vector_store %arg5[%c0_10, %c0_11], %13 {strides = array<i32>} : memref<1x64xf32, #tpu.memory_space<vmem>>, vector<1x64xf32>,
    return
  }
  func.func @transform_0(%arg0: i32) -> (i32, i32) {
    %c0_i32 = arith.constant 0 : i32
    %c0_i32_0 = arith.constant 0 : i32
    return %arg0, %c0_i32 : i32, i32
  }
  func.func @transform_1(%arg0: i32) -> (i32, i32) {
    %c0_i32 = arith.constant 0 : i32
    %c0_i32_0 = arith.constant 0 : i32
    %c0_i32_1 = arith.constant 0 : i32
    return %c0_i32, %c0_i32_0 : i32, i32
  }
  func.func @transform_2(%arg0: i32) -> (i32, i32) {
    %c0_i32 = arith.constant 0 : i32
    %c0_i32_0 = arith.constant 0 : i32
    %c0_i32_1 = arith.constant 0 : i32
    return %c0_i32, %c0_i32_0 : i32, i32
  }
  func.func @transform_3(%arg0: i32) -> (i32, i32) {
    %c0_i32 = arith.constant 0 : i32
    %c0_i32_0 = arith.constant 0 : i32
    return %c0_i32, %arg0 : i32, i32
  }
  func.func @transform_4(%arg0: i32) -> (i32, i32) {
    %c0_i32 = arith.constant 0 : i32
    %c0_i32_0 = arith.constant 0 : i32
    return %c0_i32, %arg0 : i32, i32
  }
}

</mosaic_0001>

<bundles_post_ra>
// kernel: tpu_custom_call.1
= control target key start
LH: loop header
LB: loop body
LE: loop exit
PB: predicated region body
PF: predicated region fallthrough
CT: control target
= control target key end

     0   :  { %9 = vsyncpa [#allocation3], 0  ;;  %s368_s0 = inlined_call_operand.hbm [shape: f32[64,128], index: 0, kind: input, shape index: {}]   ;;  %s369_s1 = inlined_call_operand.hbm [shape: f32[64,128], index: 1, kind: input, shape index: {}]   ;;  %s370_s2 = inlined_call_operand.vmem [shape: f32[1,64], index: 2, kind: input, shape index: {}]   ;;  %s371_s3 = inlined_call_operand.vmem [shape: f32[1,64], index: 3, kind: input, shape index: {}]   ;;  %s372_s4 = inlined_call_operand.hbm [shape: f32[1,64], index: 4, kind: output, shape index: {}]  }
   0x1   :  { %10 = vsyncpa [#allocation6], 0 }
   0x2   :  { %11 = vsyncpa [#allocation4], 0  ;;  %s16_s17 = sshll.u32 %s368_s0, 4  ;;  %s314_s18 = smov [#allocation2]   ;;  %s17_s17 = int_to_ptr.hbm [resolvable:$true] %s16_s17 }
   0x3   :  { %s18_s19 = sshll.u32 %s314_s18, 4  ;;  %s29_s22 = sshll.u32 %s369_s1, 4  ;;  %s19_s19 = int_to_ptr.vmem [resolvable:$true] %s18_s19  ;;  %s30_s22 = int_to_ptr.hbm [resolvable:$true] %s29_s22 }
   0x4   :  { %s315_s23 = smov 128   ;;  %s316_s24 = smov 8  }
   0x5   :  { %24 = dma.hbm_to_vmem [thread:$0]  %s17_s17, 1024, %s19_s19, [#allocation3], %s315_s23, %s315_s23, %s316_s24  }
   0x6   :  { %s317_s25 = smov [#allocation5]  }
   0x7   :  { %s31_s26 = sshll.u32 %s317_s25, 4  ;;  %s32_s26 = int_to_ptr.vmem [resolvable:$true] %s31_s26 }
   0x8   :  { %37 = dma.hbm_to_vmem [thread:$0]  %s30_s22, 1024, %s32_s26, [#allocation6], %s315_s23, %s315_s23, %s316_s24  }
   0x9   :  { %308 = dma.done.wait [#allocation3], 1024  }
   0xa   :  { %309 = vsyncadd [#allocation3], 4294966272 }
   0xb   :  { %310 = dma.done.wait [#allocation6], 1024  }
   0xc   :  { %311 = vsyncadd [#allocation6], 4294966272  ;;  %v65_v0 = vld [vmem:[#allocation5 + $0x38] sm:$0xff]  ;;  %v64_v1 = vld [vmem:[#allocation5 + $0x30] sm:$0xff]  ;;  %vm117_vm0 = vcmask 523264   ;;  %vm184_vm5 = vcmask 516096  }
   0xd   :  { %214 = vmatpush.xpose.msra.mxu3 %v65_v0  ;;  %213 = vmatpush.xpose.msra.mxu2 %v65_v0  ;;  %v63_v2 = vld [vmem:[#allocation5 + $0x28] sm:$0xff]  ;;  %v62_v3 = vld [vmem:[#allocation5 + $0x20] sm:$0xff]  ;;  %v61_v4 = vld [vmem:[#allocation5 + $0x18] sm:$0xff] }
   0xe   :  { %74 = vmatpush.xpose.msra.mxu0 %v65_v0  ;;  %v60_v5 = vld [vmem:[#allocation5 + $0x10] sm:$0xff]  ;;  %v59_v6 = vld [vmem:[#allocation5 + $0x8] sm:$0xff]  ;;  %v58_v7 = vld [vmem:[#allocation5] sm:$0xff] }
   0xf   :  { %v55_v8 = vld [vmem:[#allocation2 + $0x28] sm:$0xff]  ;;  %v52_v9 = vld [vmem:[#allocation2 + $0x10] sm:$0xff]  ;;  %v50_v10 = vld [vmem:[#allocation2] sm:$0xff] }
  0x10   :  { %v56_v11 = vld [vmem:[#allocation2 + $0x30] sm:$0xff]  ;;  %v53_v12 = vld [vmem:[#allocation2 + $0x18] sm:$0xff]  ;;  %v51_v13 = vld [vmem:[#allocation2 + $0x8] sm:$0xff] }
  0x11   :  { %216 = vmatpush.xpose.msra.mxu3 %v64_v1  ;;  %215 = vmatpush.xpose.msra.mxu2 %v64_v1  ;;  %v57_v14 = vld [vmem:[#allocation2 + $0x38] sm:$0xff]  ;;  %v54_v15 = vld [vmem:[#allocation2 + $0x20] sm:$0xff] }
  0x12   :  { %75 = vmatpush.xpose.msra.mxu0 %v64_v1  ;;  %v107_v31 = vld [vmem:[%s370_s2] sm:$0x1]  ;;  %s318_s2 = smov [#allocation7]  }
  0x13   :  { %v108_v33 = vand.u32 2147483647, %v107_v31  ;;  %v165_v35 = vld [vmem:[%s371_s3] sm:$0x1]  ;;  %s191_s29 = sshll.u32 %s318_s2, 4  ;;  %s193_s3 = sshll.u32 %s372_s4, 4  ;;  %s192_s29 = int_to_ptr.vmem [resolvable:$true] %s191_s29  ;;  %s194_s3 = int_to_ptr.hbm [resolvable:$true] %s193_s3 }
  0x14   :  { %v166_v36 = vand.u32 2147483647, %v165_v35 }
  0x15   :  { %218 = vmatpush.xpose.msra.mxu3 %v63_v2  ;;  %217 = vmatpush.xpose.msra.mxu2 %v63_v2 }
  0x16   :  { %76 = vmatpush.xpose.msra.mxu0 %v63_v2  ;;  %v167_v40 = vadd.f32 1e-06, %v166_v36 }
  0x18   :  { %v168_v45 = vmul.f32 2.0, %v167_v40 }
  0x19   :  { %220 = vmatpush.xpose.msra.mxu3 %v62_v3  ;;  %219 = vmatpush.xpose.msra.mxu2 %v62_v3 }
  0x1a   :  { %77 = vmatpush.xpose.msra.mxu0 %v62_v3 }
  0x1d   :  { %222 = vmatpush.xpose.msra.mxu3 %v61_v4  ;;  %221 = vmatpush.xpose.msra.mxu2 %v61_v4 }
  0x1e   :  { %78 = vmatpush.xpose.msra.mxu0 %v61_v4 }
  0x21   :  { %224 = vmatpush.xpose.msra.mxu3 %v60_v5  ;;  %223 = vmatpush.xpose.msra.mxu2 %v60_v5 }
  0x22   :  { %79 = vmatpush.xpose.msra.mxu0 %v60_v5 }
  0x25   :  { %226 = vmatpush.xpose.msra.mxu3 %v59_v6  ;;  %225 = vmatpush.xpose.msra.mxu2 %v59_v6 }
  0x26   :  { %80 = vmatpush.xpose.msra.mxu0 %v59_v6 }
  0x29   :  { %228 = vmatpush.xpose.msra.mxu3 %v58_v7  ;;  %227 = vmatpush.xpose.msra.mxu2 %v58_v7 }
  0x2a   :  { %81 = vmatpush.xpose.msra.mxu0 %v58_v7 }
  0x2c   :  { %97 = vmatmul.f32.vlgmr.msra.gmra.mxu3 %v55_v8  ;;  %88 = vmatmul.f32.vlgmr.msra.gmra.mxu2 %v52_v9 }
  0x2d   :  { %82 = vmatmul.f32.vlgmr.msra.gmra.mxu0 %v50_v10 }
  0x34   :  { %100 = vmatmul.f32.gmra.mxu3 %v56_v11  ;;  %91 = vmatmul.f32.gmra.mxu2 %v53_v12 }
  0x35   :  { %85 = vmatmul.f32.gmra.mxu0 %v51_v13 }
  0x3c   :  { %103 = vmatmul.f32.gmra.mxu3 %v57_v14  ;;  %94 = vmatmul.f32.gmra.mxu2 %v54_v15 }
  0xaa   :  { %v83_v25 = vpop.f32.mrf.mxu0 }
  0xab   :  { %v109_v32 = vand.u32 2147483647, %v83_v25 }
  0xaf   :  { %v98_v16 = vpop.f32.mrf.mxu3  ;;  %v89_v17 = vpop.f32.mrf.mxu2 }
  0xb0   :  { %v114_v24 = vand.u32 2147483647, %v98_v16  ;;  %v111_v29 = vand.u32 2147483647, %v89_v17 }
  0xb2   :  { %v86_v28 = vpop.f32.mrf.mxu0 }
  0xb3   :  { %v110_v30 = vand.u32 2147483647, %v86_v28 }
  0xb7   :  { %v101_v18 = vpop.f32.mrf.mxu3  ;;  %v92_v19 = vpop.f32.mrf.mxu2 }
  0xb8   :  { %v115_v22 = vand.u32 2147483647, %v101_v18  ;;  %v112_v27 = vand.u32 2147483647, %v92_v19 }
  0xbf   :  { %v104_v20 = vpop.f32.mrf.mxu3  ;;  %v95_v23 = vpop.f32.mrf.mxu2 }
  0xc0   :  { %v116_v21 = vand.u32 2147483647, %v104_v20  ;;  %v113_v26 = vand.u32 2147483647, %v95_v23 }
  0xc2   :  { %204 = vmatpush.xpose.msk.msra.mxu1 %vm117_vm0, %v116_v21 }
  0xc6   :  { %205 = vmatpush.xpose.msk.msra.mxu1 %vm117_vm0, %v115_v22 }
  0xca   :  { %206 = vmatpush.xpose.msk.msra.mxu1 %vm117_vm0, %v114_v24 }
  0xce   :  { %207 = vmatpush.xpose.msk.msra.mxu1 %vm117_vm0, %v113_v26 }
  0xd2   :  { %208 = vmatpush.xpose.msk.msra.mxu1 %vm117_vm0, %v112_v27 }
  0xd6   :  { %209 = vmatpush.xpose.msk.msra.mxu1 %vm117_vm0, %v111_v29 }
  0xda   :  { %210 = vmatpush.xpose.msk.msra.mxu1 %vm117_vm0, %v110_v30 }
  0xde   :  { %211 = vmatpush.xpose.msk.msra.mxu1 %vm117_vm0, %v109_v32 }
  0xe1   :  { %212 = vmatmul.msk.f32.vlgmr.msra.gmra.mxu1 %vm117_vm0, %v108_v33 }
 0x15e   :  { %v162_v34 = vpop.f32.mrf.mxu1 }
 0x15f   :  { %234 = vrcp.f32 %v162_v34  ;;  %v180_v41 = vand.u32 2147483648, %v162_v34  ;;  %v178_v43 = vand.u32 2147483647, %v162_v34  ;;  %vm174_vm2 = vweird.f32 %v162_v34 }
 0x161   :  { %v181_v46 = vor.u32 1.1754944e-38, %v180_v41  ;;  %vm179_vm4 = vcmp.eq.f32.partialorder %v178_v43, 8.507059e+37 }
 0x165   :  { %v235_v37 = vpop.eup %234 }
 0x166   :  { %v170_v38 = vmul.f32 %v235_v37, %v162_v34  ;;  %vm175_vm1 = vweird.f32 %v235_v37 }
 0x167   :  { %vm176_vm3 = vmor %vm174_vm2, %vm175_vm1 }
 0x168   :  { %v171_v39 = vsub.f32 1.0, %v170_v38 }
 0x16a   :  { %v172_v42 = vmul.f32 %v235_v37, %v171_v39 }
 0x16c   :  { %v173_v44 = vadd.f32 %v235_v37, %v172_v42 }
 0x16e   :  { %v177_v47 = vsel %vm176_vm3, %v235_v37, %v173_v44 }
 0x16f   :  { %v182_v48 = vsel %vm179_vm4, %v181_v46, %v177_v47 }
 0x170   :  { %v183_v49 = vmul.f32 %v182_v48, %v168_v45 }
 0x172   :  { %185 = vst.msk [vmem:[#allocation7] sm:$0x1] %vm184_vm5, %v183_v49 }
 0x173   :  { %196 = dma.vmem_to_hbm [thread:$0]  %s192_s29, 16, %s194_s3, [#allocation4]  }
 0x174   :  { %312 = dma.done.wait [#allocation4], 16  }
 0x175   :  { %313 = vsyncadd [#allocation4], 4294967280 }
 0x176   :  { %201 = vsyncpa [#allocation3], 1 }
 0x177   :  { %202 = vsyncpa [#allocation6], 1 }
 0x178   :  { %203 = vsyncpa [#allocation4], 1 }

// kernel: tpu_custom_call.1
= control target key start
LH: loop header
LB: loop body
LE: loop exit
PB: predicated region body
PF: predicated region fallthrough
CT: control target
= control target key end

     0   :  { %9 = vsyncpa [#allocation3], 0  ;;  %s368_s0 = inlined_call_operand.hbm [shape: f32[64,128], index: 0, kind: input, shape index: {}]   ;;  %s369_s1 = inlined_call_operand.hbm [shape: f32[64,128], index: 1, kind: input, shape index: {}]   ;;  %s370_s2 = inlined_call_operand.vmem [shape: f32[1,64], index: 2, kind: input, shape index: {}]   ;;  %s371_s3 = inlined_call_operand.vmem [shape: f32[1,64], index: 3, kind: input, shape index: {}]   ;;  %s372_s4 = inlined_call_operand.hbm [shape: f32[1,64], index: 4, kind: output, shape index: {}]  }
   0x1   :  { %10 = vsyncpa [#allocation6], 0 }
   0x2   :  { %11 = vsyncpa [#allocation4], 0  ;;  %s16_s17 = sshll.u32 %s368_s0, 4  ;;  %s314_s18 = smov [#allocation2]   ;;  %s17_s17 = int_to_ptr.hbm [resolvable:$true] %s16_s17 }
   0x3   :  { %s18_s19 = sshll.u32 %s314_s18, 4  ;;  %s29_s22 = sshll.u32 %s369_s1, 4  ;;  %s19_s19 = int_to_ptr.vmem [resolvable:$true] %s18_s19  ;;  %s30_s22 = int_to_ptr.hbm [resolvable:$true] %s29_s22 }
   0x4   :  { %s315_s23 = smov 128   ;;  %s316_s24 = smov 8  }
   0x5   :  { %24 = dma.hbm_to_vmem [thread:$0]  %s17_s17, 1024, %s19_s19, [#allocation3], %s315_s23, %s315_s23, %s316_s24  }
   0x6   :  { %s317_s25 = smov [#allocation5]  }
   0x7   :  { %s31_s26 = sshll.u32 %s317_s25, 4  ;;  %s32_s26 = int_to_ptr.vmem [resolvable:$true] %s31_s26 }
   0x8   :  { %37 = dma.hbm_to_vmem [thread:$0]  %s30_s22, 1024, %s32_s26, [#allocation6], %s315_s23, %s315_s23, %s316_s24  }
   0x9   :  { %308 = dma.done.wait [#allocation3], 1024  }
   0xa   :  { %309 = vsyncadd [#allocation3], 4294966272 }
   0xb   :  { %310 = dma.done.wait [#allocation6], 1024  }
   0xc   :  { %311 = vsyncadd [#allocation6], 4294966272  ;;  %v65_v0 = vld [vmem:[#allocation5 + $0x38] sm:$0xff]  ;;  %v64_v1 = vld [vmem:[#allocation5 + $0x30] sm:$0xff]  ;;  %vm117_vm0 = vcmask 523264   ;;  %vm184_vm5 = vcmask 516096  }
   0xd   :  { %214 = vmatpush.xpose.msra.mxu3 %v65_v0  ;;  %213 = vmatpush.xpose.msra.mxu2 %v65_v0  ;;  %v63_v2 = vld [vmem:[#allocation5 + $0x28] sm:$0xff]  ;;  %v62_v3 = vld [vmem:[#allocation5 + $0x20] sm:$0xff]  ;;  %v61_v4 = vld [vmem:[#allocation5 + $0x18] sm:$0xff] }
   0xe   :  { %74 = vmatpush.xpose.msra.mxu0 %v65_v0  ;;  %v60_v5 = vld [vmem:[#allocation5 + $0x10] sm:$0xff]  ;;  %v59_v6 = vld [vmem:[#allocation5 + $0x8] sm:$0xff]  ;;  %v58_v7 = vld [vmem:[#allocation5] sm:$0xff] }
   0xf   :  { %v55_v8 = vld [vmem:[#allocation2 + $0x28] sm:$0xff]  ;;  %v52_v9 = vld [vmem:[#allocation2 + $0x10] sm:$0xff]  ;;  %v50_v10 = vld [vmem:[#allocation2] sm:$0xff] }
  0x10   :  { %v56_v11 = vld [vmem:[#allocation2 + $0x30] sm:$0xff]  ;;  %v53_v12 = vld [vmem:[#allocation2 + $0x18] sm:$0xff]  ;;  %v51_v13 = vld [vmem:[#allocation2 + $0x8] sm:$0xff] }
  0x11   :  { %216 = vmatpush.xpose.msra.mxu3 %v64_v1  ;;  %215 = vmatpush.xpose.msra.mxu2 %v64_v1  ;;  %v57_v14 = vld [vmem:[#allocation2 + $0x38] sm:$0xff]  ;;  %v54_v15 = vld [vmem:[#allocation2 + $0x20] sm:$0xff] }
  0x12   :  { %75 = vmatpush.xpose.msra.mxu0 %v64_v1  ;;  %v107_v31 = vld [vmem:[%s370_s2] sm:$0x1]  ;;  %s318_s2 = smov [#allocation7]  }
  0x13   :  { %v108_v33 = vand.u32 2147483647, %v107_v31  ;;  %v165_v35 = vld [vmem:[%s371_s3] sm:$0x1]  ;;  %s191_s29 = sshll.u32 %s318_s2, 4  ;;  %s193_s3 = sshll.u32 %s372_s4, 4  ;;  %s192_s29 = int_to_ptr.vmem [resolvable:$true] %s191_s29  ;;  %s194_s3 = int_to_ptr.hbm [resolvable:$true] %s193_s3 }
  0x14   :  { %v166_v36 = vand.u32 2147483647, %v165_v35 }
  0x15   :  { %218 = vmatpush.xpose.msra.mxu3 %v63_v2  ;;  %217 = vmatpush.xpose.msra.mxu2 %v63_v2 }
  0x16   :  { %76 = vmatpush.xpose.msra.mxu0 %v63_v2  ;;  %v167_v40 = vadd.f32 1e-06, %v166_v36 }
  0x18   :  { %v168_v45 = vmul.f32 2.0, %v167_v40 }
  0x19   :  { %220 = vmatpush.xpose.msra.mxu3 %v62_v3  ;;  %219 = vmatpush.xpose.msra.mxu2 %v62_v3 }
  0x1a   :  { %77 = vmatpush.xpose.msra.mxu0 %v62_v3 }
  0x1d   :  { %222 = vmatpush.xpose.msra.mxu3 %v61_v4  ;;  %221 = vmatpush.xpose.msra.mxu2 %v61_v4 }
  0x1e   :  { %78 = vmatpush.xpose.msra.mxu0 %v61_v4 }
  0x21   :  { %224 = vmatpush.xpose.msra.mxu3 %v60_v5  ;;  %223 = vmatpush.xpose.msra.mxu2 %v60_v5 }
  0x22   :  { %79 = vmatpush.xpose.msra.mxu0 %v60_v5 }
  0x25   :  { %226 = vmatpush.xpose.msra.mxu3 %v59_v6  ;;  %225 = vmatpush.xpose.msra.mxu2 %v59_v6 }
  0x26   :  { %80 = vmatpush.xpose.msra.mxu0 %v59_v6 }
  0x29   :  { %228 = vmatpush.xpose.msra.mxu3 %v58_v7  ;;  %227 = vmatpush.xpose.msra.mxu2 %v58_v7 }
  0x2a   :  { %81 = vmatpush.xpose.msra.mxu0 %v58_v7 }
  0x2c   :  { %97 = vmatmul.f32.vlgmr.msra.gmra.mxu3 %v55_v8  ;;  %88 = vmatmul.f32.vlgmr.msra.gmra.mxu2 %v52_v9 }
  0x2d   :  { %82 = vmatmul.f32.vlgmr.msra.gmra.mxu0 %v50_v10 }
  0x34   :  { %100 = vmatmul.f32.gmra.mxu3 %v56_v11  ;;  %91 = vmatmul.f32.gmra.mxu2 %v53_v12 }
  0x35   :  { %85 = vmatmul.f32.gmra.mxu0 %v51_v13 }
  0x3c   :  { %103 = vmatmul.f32.gmra.mxu3 %v57_v14  ;;  %94 = vmatmul.f32.gmra.mxu2 %v54_v15 }
  0xaa   :  { %v83_v25 = vpop.f32.mrf.mxu0 }
  0xab   :  { %v109_v32 = vand.u32 2147483647, %v83_v25 }
  0xaf   :  { %v98_v16 = vpop.f32.mrf.mxu3  ;;  %v89_v17 = vpop.f32.mrf.mxu2 }
  0xb0   :  { %v114_v24 = vand.u32 2147483647, %v98_v16  ;;  %v111_v29 = vand.u32 2147483647, %v89_v17 }
  0xb2   :  { %v86_v28 = vpop.f32.mrf.mxu0 }
  0xb3   :  { %v110_v30 = vand.u32 2147483647, %v86_v28 }
  0xb7   :  { %v101_v18 = vpop.f32.mrf.mxu3  ;;  %v92_v19 = vpop.f32.mrf.mxu2 }
  0xb8   :  { %v115_v22 = vand.u32 2147483647, %v101_v18  ;;  %v112_v27 = vand.u32 2147483647, %v92_v19 }
  0xbf   :  { %v104_v20 = vpop.f32.mrf.mxu3  ;;  %v95_v23 = vpop.f32.mrf.mxu2 }
  0xc0   :  { %v116_v21 = vand.u32 2147483647, %v104_v20  ;;  %v113_v26 = vand.u32 2147483647, %v95_v23 }
  0xc2   :  { %204 = vmatpush.xpose.msk.msra.mxu1 %vm117_vm0, %v116_v21 }
  0xc6   :  { %205 = vmatpush.xpose.msk.msra.mxu1 %vm117_vm0, %v115_v22 }
  0xca   :  { %206 = vmatpush.xpose.msk.msra.mxu1 %vm117_vm0, %v114_v24 }
  0xce   :  { %207 = vmatpush.xpose.msk.msra.mxu1 %vm117_vm0, %v113_v26 }
  0xd2   :  { %208 = vmatpush.xpose.msk.msra.mxu1 %vm117_vm0, %v112_v27 }
  0xd6   :  { %209 = vmatpush.xpose.msk.msra.mxu1 %vm117_vm0, %v111_v29 }
  0xda   :  { %210 = vmatpush.xpose.msk.msra.mxu1 %vm117_vm0, %v110_v30 }
  0xde   :  { %211 = vmatpush.xpose.msk.msra.mxu1 %vm117_vm0, %v109_v32 }
  0xe1   :  { %212 = vmatmul.msk.f32.vlgmr.msra.gmra.mxu1 %vm117_vm0, %v108_v33 }
 0x15e   :  { %v162_v34 = vpop.f32.mrf.mxu1 }
 0x15f   :  { %234 = vrcp.f32 %v162_v34  ;;  %v180_v41 = vand.u32 2147483648, %v162_v34  ;;  %v178_v43 = vand.u32 2147483647, %v162_v34  ;;  %vm174_vm2 = vweird.f32 %v162_v34 }
 0x161   :  { %v181_v46 = vor.u32 1.1754944e-38, %v180_v41  ;;  %vm179_vm4 = vcmp.eq.f32.partialorder %v178_v43, 8.507059e+37 }
 0x165   :  { %v235_v37 = vpop.eup %234 }
 0x166   :  { %v170_v38 = vmul.f32 %v235_v37, %v162_v34  ;;  %vm175_vm1 = vweird.f32 %v235_v37 }
 0x167   :  { %vm176_vm3 = vmor %vm174_vm2, %vm175_vm1 }
 0x168   :  { %v171_v39 = vsub.f32 1.0, %v170_v38 }
 0x16a   :  { %v172_v42 = vmul.f32 %v235_v37, %v171_v39 }
 0x16c   :  { %v173_v44 = vadd.f32 %v235_v37, %v172_v42 }
 0x16e   :  { %v177_v47 = vsel %vm176_vm3, %v235_v37, %v173_v44 }
 0x16f   :  { %v182_v48 = vsel %vm179_vm4, %v181_v46, %v177_v47 }
 0x170   :  { %v183_v49 = vmul.f32 %v182_v48, %v168_v45 }
 0x172   :  { %185 = vst.msk [vmem:[#allocation7] sm:$0x1] %vm184_vm5, %v183_v49 }
 0x173   :  { %196 = dma.vmem_to_hbm [thread:$0]  %s192_s29, 16, %s194_s3, [#allocation4]  }
 0x174   :  { %312 = dma.done.wait [#allocation4], 16  }
 0x175   :  { %313 = vsyncadd [#allocation4], 4294967280 }
 0x176   :  { %201 = vsyncpa [#allocation3], 1 }
 0x177   :  { %202 = vsyncpa [#allocation6], 1 }
 0x178   :  { %203 = vsyncpa [#allocation4], 1 }

</bundles_post_ra>
